<compile_context>
chip_gen: v5e
topology: v5e:2x2
jax: 0.10.0
libtpu: 0.0.40
codegen_flags: <defaults>
</compile_context>

<pallas_src>
import jax
import jax.numpy as jnp
from jax import lax
from jax.experimental import pallas as pl
from jax.experimental.pallas import tpu as pltpu

_EPS = 1e-12  # torch F.normalize default eps

# Per-block budget: 4 double-buffered blocks (in + out) stay <= 24 MiB,
# safely inside scoped VMEM on v5e/v6e and well under v7x's 64 MiB.
_BLOCK_BUDGET_BYTES = 6 * 1024 * 1024
_MAX_LANES = 2048   # measured HBM roofline saturates around 512-1024+ lanes
_MAX_ROWS = 1024


def _round_up(x, m):
    return -(-x // m) * m


def _vmem_limit(block_bytes):
    # in + out, double buffered, plus headroom; clamp to stay inside v7x VMEM.
    return int(min(max(4 * block_bytes + (2 << 20), 16 << 20), 48 << 20))


# ----------------------------------------------------------------------------
# rows path: x is (N, C); normalize each row (reduce along lanes).
# ----------------------------------------------------------------------------
def _l2norm_rows_kernel(x_ref, o_ref):
    x = x_ref[...]
    xf = x.astype(jnp.float32)
    sumsq = jnp.sum(xf * xf, axis=-1, keepdims=True)            # (tile_n, 1)
    # 1 / max(norm, eps) == min(rsqrt(sumsq), 1/eps); rsqrt(0)=inf -> clamps,
    # so all-zero rows map to zero (matches torch semantics).
    inv = jnp.minimum(lax.rsqrt(sumsq), jnp.float32(1.0 / _EPS))
    o_ref[...] = (x * inv.astype(x.dtype)).astype(o_ref.dtype)


def _l2norm_rows(x):
    n, c = x.shape
    itemsize = jnp.dtype(x.dtype).itemsize

    tile_n = max(8, (_BLOCK_BUDGET_BYTES // max(c * itemsize, 1)) // 8 * 8)
    tile_n = min(tile_n, _MAX_ROWS)
    if n >= 16:
        # give the megacore at least two grid steps
        tile_n = min(tile_n, _round_up(-(-n // 2), 8))
    if n <= tile_n:
        tile_n = n                      # single full-extent block
    grid = (pl.cdiv(n, tile_n),)

    block_bytes = tile_n * c * itemsize
    # TODO(synk): for pathologically large C (8*C*itemsize > budget) tile C
    # with an accumulator instead of relying on a raised vmem limit.
    return pl.pallas_call(
        _l2norm_rows_kernel,
        out_shape=jax.ShapeDtypeStruct((n, c), x.dtype),
        grid_spec=pltpu.PrefetchScalarGridSpec(
            num_scalar_prefetch=0,
            grid=grid,
            in_specs=[pl.BlockSpec((tile_n, c), lambda i: (i, 0))],
            out_specs=pl.BlockSpec((tile_n, c), lambda i: (i, 0)),
        ),
        compiler_params=pltpu.CompilerParams(
            dimension_semantics=("parallel",),
            vmem_limit_bytes=_vmem_limit(block_bytes),
        ),
    )(x)


# ----------------------------------------------------------------------------
# cols path: x is (N, C, HW); normalize each column (reduce over sublanes/C).
# ----------------------------------------------------------------------------
def _l2norm_cols_kernel(x_ref, o_ref):
    # block: (C, TILE_HW) -- the leading size-1 batch dim is squeezed out.
    x = x_ref[...]
    xf = x.astype(jnp.float32)
    sumsq = jnp.sum(xf * xf, axis=0, keepdims=True)             # (1, TILE_HW)
    inv = jnp.minimum(lax.rsqrt(sumsq), jnp.float32(1.0 / _EPS))
    o_ref[...] = (x * inv.astype(x.dtype)).astype(o_ref.dtype)


def _l2norm_cols(x_flat):
    n, c, hw = x_flat.shape
    itemsize = jnp.dtype(x_flat.dtype).itemsize

    # Largest lane tile the VMEM budget allows (multiple of 128).  The grid is
    # pl.cdiv, so the tile need not divide HW: Pallas clips the ragged last
    # block; OOB lanes are garbage on read / dropped on write, and this is a
    # per-column reduction so they never contaminate valid columns.
    max_lanes = max(128, (_BLOCK_BUDGET_BYTES // max(c * itemsize, 1)) // 128 * 128)
    max_lanes = min(max_lanes, _MAX_LANES)
    tile_hw = hw if hw <= max_lanes else max_lanes   # full extent OK when small
    grid = (n, pl.cdiv(hw, tile_hw))

    block_bytes = c * tile_hw * itemsize
    return pl.pallas_call(
        _l2norm_cols_kernel,
        out_shape=jax.ShapeDtypeStruct((n, c, hw), x_flat.dtype),
        grid_spec=pltpu.PrefetchScalarGridSpec(
            num_scalar_prefetch=0,
            grid=grid,
            # None -> size-1 batch dim squeezed; kernel sees (c, tile_hw).
            in_specs=[pl.BlockSpec((None, c, tile_hw), lambda i, j: (i, 0, j))],
            out_specs=pl.BlockSpec((None, c, tile_hw), lambda i, j: (i, 0, j)),
        ),
        compiler_params=pltpu.CompilerParams(
            dimension_semantics=("parallel", "parallel"),
            vmem_limit_bytes=_vmem_limit(block_bytes),
        ),
    )(x_flat)


def l2norm(x):
    """F.normalize(x, p=2, dim=1) for 2-D (N, C) or 4-D NCHW inputs."""
    if x.ndim == 2:
        return _l2norm_rows(x)
    if x.ndim == 4:
        n, c, h, w = x.shape
        hw = h * w
        if hw == 1:
            # post-GeM descriptor (N, C, 1, 1): row layout, C on lanes.
            return _l2norm_rows(x.reshape(n, c)).reshape(n, c, h, w)
        return _l2norm_cols(x.reshape(n, c, hw)).reshape(n, c, h, w)
    raise ValueError(f"l2norm expects 2-D or 4-D input, got shape {x.shape}")


# TODO(synk): for the tiny (batch, 2048) tensor this head actually normalizes,
# fusing L2Norm into the preceding Linear's epilogue (or leaving it to XLA)
# avoids one standalone memory-bound kernel launch entirely.


if __name__ == "__main__":
    key = jax.random.PRNGKey(0)
    k1, k2, k3, k4, k5 = jax.random.split(key, 5)

    def ref_l2norm(x, axis=1):
        norm = jnp.sqrt(jnp.sum(x * x, axis=axis, keepdims=True))
        return x / jnp.maximum(norm, _EPS)

    # 2-D rows path: the tensor L2Norm sees in Model.mean_head (batch, mu_dim)
    x2d = jax.random.normal(k1, (4, 2048), dtype=jnp.float32)
    out2d = l2norm(x2d)
    jax.block_until_ready(out2d)
    assert out2d.shape == x2d.shape
    assert jnp.allclose(out2d, ref_l2norm(x2d), atol=1e-5, rtol=1e-5)

    # 4-D cols path, HW a multiple of 128
    x4d = jax.random.normal(k2, (2, 4, 16, 16), dtype=jnp.float32)
    out4d = l2norm(x4d)
    jax.block_until_ready(out4d)
    assert jnp.allclose(out4d, ref_l2norm(x4d), atol=1e-5, rtol=1e-5)

    # 4-D cols path, small ragged HW (7x7 feature maps) -> full-extent lane block
    x7 = jax.random.normal(k3, (2, 8, 7, 7), dtype=jnp.float32)
    out7 = l2norm(x7)
    jax.block_until_ready(out7)
    assert jnp.allclose(out7, ref_l2norm(x7), atol=1e-5, rtol=1e-5)

    # 4-D cols path, HW larger than the lane tile and not a multiple of it
    # (exercises the clipped ragged last block, no wrapper pad/slice)
    x48 = jax.random.normal(k4, (1, 4, 48, 48), dtype=jnp.float32)
    out48 = l2norm(x48)
    jax.block_until_ready(out48)
    assert jnp.allclose(out48, ref_l2norm(x48), atol=1e-5, rtol=1e-5)

    # post-GeM-shaped descriptor (N, C, 1, 1) -> rows fast path
    xg = jax.random.normal(k5, (2, 32, 1, 1), dtype=jnp.float32)
    outg = l2norm(xg)
    jax.block_until_ready(outg)
    assert jnp.allclose(outg, ref_l2norm(xg), atol=1e-5, rtol=1e-5)

    print("KERNEL_OK")
</pallas_src>

<mosaic_0001>
module attributes {stable_mosaic.version = 11 : i64} {
  func.func @_l2norm_rows_kernel(%arg0: i32, %arg1: memref<4x2048xf32, #tpu.memory_space<vmem>>, %arg2: memref<4x2048xf32, #tpu.memory_space<vmem>>) attributes {dimension_semantics = [#tpu.dimension_semantics<parallel>], iteration_bounds = array<i64: 1>, scalar_prefetch = 0 : i64, scratch_operands = 0 : i64, tpu.core_type = #tpu.core_type<tc>, window_params = [{transform_indices = @transform_0, window_bounds = array<i64: 4, 2048>}, {transform_indices = @transform_1, window_bounds = array<i64: 4, 2048>}]} {
    %c0 = arith.constant 0 : index
    %c0_0 = arith.constant 0 : index
    %0 = vector.load %arg1[%c0, %c0_0] : memref<4x2048xf32, #tpu.memory_space<vmem>>, vector<4x2048xf32>
    %1 = arith.mulf %0, %0 : vector<4x2048xf32>
    %cst = arith.constant dense<0.000000e+00> : vector<4xf32>
    %2 = vector.multi_reduction <add>, %1, %cst [1] : vector<4x2048xf32> to vector<4xf32>
    %3 = vector.shape_cast %2 : vector<4xf32> to vector<4x1xf32>
    %4 = math.rsqrt %3 : vector<4x1xf32>
    %cst_1 = arith.constant 9.99999995E+11 : f32
    %5 = vector.broadcast %cst_1 : f32 to vector<4x1xf32>
    %6 = arith.minimumf %4, %5 : vector<4x1xf32>
    %7 = vector.broadcast %6 : vector<4x1xf32> to vector<4x2048xf32>
    %8 = arith.mulf %0, %7 : vector<4x2048xf32>
    %c0_2 = arith.constant 0 : index
    %c0_3 = arith.constant 0 : index
    %9 = vector.load %arg2[%c0_2, %c0_3] : memref<4x2048xf32, #tpu.memory_space<vmem>>, vector<4x2048xf32>
    tpu.vector_store %arg2[%c0_2, %c0_3], %8 {strides = array<i32>} : memref<4x2048xf32, #tpu.memory_space<vmem>>, vector<4x2048xf32>,
    return
  }
  func.func @transform_0(%arg0: i32) -> (i32, i32) {
    %c0_i32 = arith.constant 0 : i32
    %c0_i32_0 = arith.constant 0 : i32
    return %arg0, %c0_i32 : i32, i32
  }
  func.func @transform_1(%arg0: i32) -> (i32, i32) {
    %c0_i32 = arith.constant 0 : i32
    %c0_i32_0 = arith.constant 0 : i32
    return %arg0, %c0_i32 : i32, i32
  }
}

</mosaic_0001>

<bundles_post_ra>
// kernel: tpu_custom_call.1
= control target key start
LH: loop header
LB: loop body
LE: loop exit
PB: predicated region body
PF: predicated region fallthrough
CT: control target
= control target key end

     0   :  { %6 = vsyncpa [#allocation3], 0  ;;  %s306_s0 = inlined_call_operand.hbm [shape: f32[4,2048], index: 0, kind: input, shape index: {}]   ;;  %s307_s1 = inlined_call_operand.hbm [shape: f32[4,2048], index: 1, kind: output, shape index: {}]  }
   0x1   :  { %7 = vsyncpa [#allocation4], 0  ;;  %s13_s8 = sshll.u32 %s306_s0, 4  ;;  %s231_s9 = smov [#allocation2]   ;;  %s14_s8 = int_to_ptr.hbm [resolvable:$true] %s13_s8 }
   0x2   :  { %s15_s10 = sshll.u32 %s231_s9, 4  ;;  %s16_s10 = int_to_ptr.vmem [resolvable:$true] %s15_s10 }
   0x3   :  { %18 = dma.hbm_to_vmem [thread:$0]  %s14_s8, 1024, %s16_s10, [#allocation3]  }
   0x4   :  { %227 = dma.done.wait [#allocation3], 1024  }
   0x5   :  { %228 = vsyncadd [#allocation3], 4294966272  ;;  %v247_v0 = vld [vmem:[#allocation2] sm:$0xff]  ;;  %v249_v1 = vld [vmem:[#allocation2 + $0x8] sm:$0xff]  ;;  %vm90_vm0 = vcmask 1043456   ;;  %s233_s0 = smov [#allocation5]  }
   0x6   :  { %v251_v2 = vld [vmem:[#allocation2 + $0x10] sm:$0xff]  ;;  %v253_v3 = vld [vmem:[#allocation2 + $0x18] sm:$0xff]  ;;  %v31_v4 = vmul.f32 %v247_v0, %v247_v0  ;;  %v32_v5 = vmul.f32 %v249_v1, %v249_v1  ;;  %v263_v8 = vld [vmem:[#allocation2 + $0x20] sm:$0xff]  ;;  %s162_s11 = sshll.u32 %s233_s0, 4  ;;  %s164_s14 = sshll.u32 %s307_s1, 4  ;;  %s163_s11 = int_to_ptr.vmem [resolvable:$true] %s162_s11  ;;  %s165_s14 = int_to_ptr.hbm [resolvable:$true] %s164_s14 }
   0x7   :  { %v33_v6 = vmul.f32 %v251_v2, %v251_v2  ;;  %v34_v7 = vmul.f32 %v253_v3, %v253_v3  ;;  %v265_v9 = vld [vmem:[#allocation2 + $0x28] sm:$0xff]  ;;  %v267_v10 = vld [vmem:[#allocation2 + $0x30] sm:$0xff]  ;;  %v269_v11 = vld [vmem:[#allocation2 + $0x38] sm:$0xff]  ;;  %v35_v12 = vmul.f32 %v263_v8, %v263_v8 }
   0x8   :  { %47 = vst [vmem:[#allocation1] ss:$2 sm:$0xff] %v31_v4  ;;  %v36_v14 = vmul.f32 %v265_v9, %v265_v9  ;;  %v37_v17 = vmul.f32 %v267_v10, %v267_v10  ;;  %v38_v19 = vmul.f32 %v269_v11, %v269_v11 }
   0x9   :  { %49 = vst [vmem:[#allocation1 + $0x10] ss:$2 sm:$0xff] %v32_v5 }
   0xa   :  { %51 = vst [vmem:[#allocation1 + $0x20] ss:$2 sm:$0xff] %v33_v6 }
   0xb   :  { %53 = vst [vmem:[#allocation1 + $0x30] ss:$2 sm:$0xff] %v34_v7 }
   0xf   :  { %v54_v13 = vld.sshfl [vmem:[#allocation1] sm:$0xff pattern:$0x75316420]  ;;  %v55_v15 = vld.sshfl [vmem:[#allocation1 + $0x8] sm:$0xff pattern:$0x75316420] }
  0x10   :  { %v56_v16 = vld.sshfl [vmem:[#allocation1 + $0x10] sm:$0xff pattern:$0x75316420]  ;;  %v57_v18 = vld.sshfl [vmem:[#allocation1 + $0x18] sm:$0xff pattern:$0x75316420] }
  0x11   :  { %v58_v20 = vld.sshfl [vmem:[#allocation1 + $0x20] sm:$0xff pattern:$0x75316420]  ;;  %v59_v21 = vld.sshfl [vmem:[#allocation1 + $0x28] sm:$0xff pattern:$0x75316420] }
  0x12   :  { %62 = vst [vmem:[#allocation1] ss:$2 sm:$0xff] %v35_v12  ;;  %v91_v22 = vsel %vm90_vm0, %v54_v13, 0.0  ;;  %v92_v23 = vsel %vm90_vm0, %v55_v15, 0.0  ;;  %v94_v24 = vsel %vm90_vm0, %v56_v16, 0.0  ;;  %v96_v28 = vsel %vm90_vm0, %v57_v18, 0.0 }
  0x13   :  { %v60_v25 = vld.sshfl [vmem:[#allocation1 + $0x30] sm:$0xff pattern:$0x75316420]  ;;  %63 = vst [vmem:[#allocation1 + $0x10] ss:$2 sm:$0xff] %v36_v14  ;;  %v93_v26 = vadd.f32 %v92_v23, %v91_v22  ;;  %v98_v30 = vsel %vm90_vm0, %v58_v20, 0.0 }
  0x14   :  { %v61_v27 = vld.sshfl [vmem:[#allocation1 + $0x38] sm:$0xff pattern:$0x75316420]  ;;  %64 = vst [vmem:[#allocation1 + $0x20] ss:$2 sm:$0xff] %v37_v17  ;;  %v100_v32 = vsel %vm90_vm0, %v59_v21, 0.0 }
  0x15   :  { %65 = vst [vmem:[#allocation1 + $0x30] ss:$2 sm:$0xff] %v38_v19  ;;  %v95_v29 = vadd.f32 %v94_v24, %v93_v26  ;;  %v102_v34 = vsel %vm90_vm0, %v60_v25, 0.0  ;;  %v104_v37 = vsel %vm90_vm0, %v61_v27, 0.0  ;;  %v232_v12 = vmov 839922192  }
  0x16   :  { %v137_v13 = vunpack.c.l.s4 %v232_v12 }
  0x17   :  { %v97_v31 = vadd.f32 %v96_v28, %v95_v29 }
  0x18   :  { %v138_v16 = vunpack.c.0.s8 %v137_v13 }
  0x19   :  { %v99_v33 = vadd.f32 %v98_v30, %v97_v31  ;;  %v66_v35 = vld.sshfl [vmem:[#allocation1] sm:$0xff pattern:$0x75316420]  ;;  %v67_v38 = vld.sshfl [vmem:[#allocation1 + $0x8] sm:$0xff pattern:$0x75316420] }
  0x1a   :  { %v106_v40 = vsel %vm90_vm0, %v66_v35, 0.0  ;;  %v68_v41 = vld.sshfl [vmem:[#allocation1 + $0x10] sm:$0xff pattern:$0x75316420]  ;;  %v108_v43 = vsel %vm90_vm0, %v67_v38, 0.0 }
  0x1b   :  { %v101_v36 = vadd.f32 %v100_v32, %v99_v33  ;;  %v69_v44 = vld.sshfl [vmem:[#allocation1 + $0x18] sm:$0xff pattern:$0x75316420]  ;;  %v110_v46 = vsel %vm90_vm0, %v68_v41, 0.0 }
  0x1c   :  { %v70_v47 = vld.sshfl [vmem:[#allocation1 + $0x20] sm:$0xff pattern:$0x75316420]  ;;  %v112_v49 = vsel %vm90_vm0, %v69_v44, 0.0 }
  0x1d   :  { %v103_v39 = vadd.f32 %v102_v34, %v101_v36  ;;  %v71_v50 = vld.sshfl [vmem:[#allocation1 + $0x28] sm:$0xff pattern:$0x75316420]  ;;  %v114_v52 = vsel %vm90_vm0, %v70_v47, 0.0 }
  0x1e   :  { %v72_v53 = vld.sshfl [vmem:[#allocation1 + $0x30] sm:$0xff pattern:$0x75316420]  ;;  %v116_v55 = vsel %vm90_vm0, %v71_v50, 0.0 }
  0x1f   :  { %v105_v42 = vadd.f32 %v104_v37, %v103_v39  ;;  %v73_v56 = vld.sshfl [vmem:[#allocation1 + $0x38] sm:$0xff pattern:$0x75316420]  ;;  %v118_v58 = vsel %vm90_vm0, %v72_v53, 0.0 }
  0x20   :  { %v120_v60 = vsel %vm90_vm0, %v73_v56, 0.0 }
  0x21   :  { %v107_v45 = vadd.f32 %v106_v40, %v105_v42 }
  0x23   :  { %v109_v48 = vadd.f32 %v108_v43, %v107_v45 }
  0x25   :  { %v111_v51 = vadd.f32 %v110_v46, %v109_v48 }
  0x27   :  { %v113_v54 = vadd.f32 %v112_v49, %v111_v51 }
  0x29   :  { %v115_v57 = vadd.f32 %v114_v52, %v113_v54 }
  0x2b   :  { %v117_v59 = vadd.f32 %v116_v55, %v115_v57 }
  0x2d   :  { %v119_v61 = vadd.f32 %v118_v58, %v117_v59 }
  0x2f   :  { %v121_v62 = vadd.f32 %v120_v60, %v119_v61 }
  0x31   :  { %122 = vadd.xlane.f32.xlu0 %v121_v62 }
  0xa4   :  { %v123_v63 = vpop.xlane.xlu0 %122 }
  0xa5   :  { %177 = vrsqrt.f32 %v123_v63  ;;  %vm130_vm2 = vweird.f32 %v123_v63 }
  0xab   :  { %v178_v4 = vpop.eup %177 }
  0xac   :  { %v125_v5 = vmul.f32 %v178_v4, %v123_v63  ;;  %vm131_vm1 = vweird.f32 %v178_v4 }
  0xad   :  { %vm132_vm3 = vmor %vm130_vm2, %vm131_vm1 }
  0xae   :  { %v126_v6 = vmul.f32 %v178_v4, %v125_v5 }
  0xb0   :  { %v127_v7 = vmul.f32 0.5, %v126_v6 }
  0xb2   :  { %v128_v14 = vsub.f32 1.5, %v127_v7 }
  0xb4   :  { %v129_v15 = vmul.f32 %v178_v4, %v128_v14 }
  0xb6   :  { %v133_v17 = vsel %vm132_vm3, %v178_v4, %v129_v15 }
  0xb7   :  { %v134_v18 = vmin.f32 %v133_v17, 1e+12 }
  0xb9   :  { %v139_v19 = vperm.slane %v134_v18, %v138_v16 }
  0xbb   :  { %v141_v20 = vmul.f32 %v139_v19, %v247_v0  ;;  %v142_v21 = vmul.f32 %v139_v19, %v249_v1  ;;  %v143_v22 = vmul.f32 %v139_v19, %v251_v2  ;;  %v144_v23 = vmul.f32 %v139_v19, %v253_v3 }
  0xbc   :  { %v145_v24 = vmul.f32 %v139_v19, %v263_v8  ;;  %v146_v25 = vmul.f32 %v139_v19, %v265_v9  ;;  %v147_v26 = vmul.f32 %v139_v19, %v267_v10  ;;  %v148_v0 = vmul.f32 %v139_v19, %v269_v11 }
  0xbd   :  { %149 = vst [vmem:[#allocation5] sm:$0xff] %v141_v20 }
  0xbe   :  { %150 = vst [vmem:[#allocation5 + $0x8] sm:$0xff] %v142_v21 }
  0xbf   :  { %151 = vst [vmem:[#allocation5 + $0x10] sm:$0xff] %v143_v22 }
  0xc0   :  { %152 = vst [vmem:[#allocation5 + $0x18] sm:$0xff] %v144_v23 }
  0xc1   :  { %153 = vst [vmem:[#allocation5 + $0x20] sm:$0xff] %v145_v24 }
  0xc2   :  { %154 = vst [vmem:[#allocation5 + $0x28] sm:$0xff] %v146_v25 }
  0xc3   :  { %155 = vst [vmem:[#allocation5 + $0x30] sm:$0xff] %v147_v26 }
  0xc4   :  { %156 = vst [vmem:[#allocation5 + $0x38] sm:$0xff] %v148_v0 }
  0xc5   :  { %167 = dma.vmem_to_hbm [thread:$0]  %s163_s11, 1024, %s165_s14, [#allocation4]  }
  0xc6   :  { %229 = dma.done.wait [#allocation4], 1024  }
  0xc7   :  { %230 = vsyncadd [#allocation4], 4294966272 }
  0xc8   :  { %172 = vsyncpa [#allocation3], 1 }
  0xc9   :  { %173 = vsyncpa [#allocation4], 1 }

</bundles_post_ra>
